<compile_context>
chip_gen: v7x
topology: tpu7x:2x2x1
jax: 0.10.0
libtpu: 0.0.40
codegen_flags: <defaults>
</compile_context>

<pallas_src>
import functools

import jax
import jax.numpy as jnp
from jax import lax
from jax.experimental import pallas as pl
from jax.experimental.pallas import tpu as pltpu


def _nonlinear_kernel(mask_ref, x_ref, w1_ref, b1_ref, w2_ref, b2_ref, o_ref,
                      xf_ref, p1_ref, p2_ref, *, taps, bb, hw):
    # mask_ref: (K*K, L)        per-tap validity mask (0/1 float), L = bb*hw
    # x_ref:    (bb, Cin, hw)   batch block of flattened NCHW images
    # w1_ref:   (C1, K*K*Cin)   conv1 weights, tap-major / channel-minor
    # b1_ref:   (C1, 1)
    # w2_ref:   (C2, K*K*C1)    conv2 weights
    # b2_ref:   (C2, 1)
    # o_ref:    (bb, C2, hw)    lane-dense output block
    # xf_ref:   (Cin, L)        VMEM scratch: batch flattened into lanes
    # p1_ref:   (K*K*Cin, L)    VMEM scratch: im2col patches for conv1
    # p2_ref:   (K*K*C1, L)     VMEM scratch: im2col patches for conv2

    # Pack the batch block into the lane axis: (bb, Cin, hw) -> (Cin, bb*hw).
    for b in range(bb):
        xf_ref[:, b * hw:(b + 1) * hw] = x_ref[b]

    def build_patches(img, patch_ref):
        c = img.shape[0]
        for t, (shift, is_center) in enumerate(taps):
            if is_center:
                piece = img                      # no roll, no mask needed
            else:
                piece = pltpu.roll(img, shift=shift, axis=1)
                piece = piece * mask_ref[t:t + 1, :]   # zero invalid taps
            patch_ref[t * c:(t + 1) * c, :] = piece

    # ---- conv1: single MXU matmul + bias, tanh on the EUP ----
    build_patches(xf_ref[...], p1_ref)
    h = jnp.dot(w1_ref[...], p1_ref[...],
                preferred_element_type=jnp.float32)
    h = jnp.tanh(h + b1_ref[...])                # (C1, L)

    # ---- conv2: single MXU matmul + bias ----
    build_patches(h, p2_ref)
    y = jnp.dot(w2_ref[...], p2_ref[...],
                preferred_element_type=jnp.float32) + b2_ref[...]

    # Lane-dense per-image stores (each slice starts at a multiple of 128).
    for b in range(bb):
        o_ref[b] = y[:, b * hw:(b + 1) * hw].astype(o_ref.dtype)


def _pick_batch_block(batch, hw, cin, kkcin, kkc1,
                      max_lanes=2048, scratch_budget=6 << 20):
    """Largest divisor of `batch` keeping lane width + VMEM scratch sensible."""
    bytes_per_col = 4 * (cin + kkcin + kkc1 + 24)   # xf + p1 + p2 (+ padding)
    bb = 1
    for cand in range(1, batch + 1):
        if batch % cand:
            continue
        lanes = cand * hw
        if lanes <= max_lanes and lanes * bytes_per_col <= scratch_budget:
            bb = cand
    return bb


def nonlinear_layer(x_nchw, w1_oihw, b1, w2_oihw, b2, padding=1):
    """Pallas implementation of NonlinearLayer.forward (NCHW in, NCHW out)."""
    B, Cin, H, W = x_nchw.shape
    C1, _, K, _ = w1_oihw.shape
    C2 = w2_oihw.shape[0]
    if K != 2 * padding + 1:
        raise ValueError("kernel assumes a 'same' conv: kernel_size == 2*padding + 1")
    HW = H * W
    kkcin, kkc1 = K * K * Cin, K * K * C1

    bb = _pick_batch_block(B, HW, Cin, kkcin, kkc1)
    L = bb * HW

    # Static per-tap lane shifts over the batch-flattened axis + edge masks.
    # Output pixel p=(i,j) of tap (dh,dw) reads input at flat p + od*W + ow;
    # a roll by -(od*W+ow) over the flattened (batch, pixel) axis provides it,
    # and the mask zeroes every position where the read would be out of image
    # (which also covers any cross-image wrap of the flattened roll).
    taps = []
    masks = []
    pos = jnp.arange(HW, dtype=jnp.int32)
    rr, cc = pos // W, pos % W
    for dh in range(K):
        for dw in range(K):
            od, ow = dh - padding, dw - padding
            s = od * W + ow
            taps.append(((-s) % L, od == 0 and ow == 0))
            masks.append((rr + od >= 0) & (rr + od < H)
                         & (cc + ow >= 0) & (cc + ow < W))
    tap_mask = jnp.tile(jnp.stack(masks, 0).astype(x_nchw.dtype), (1, bb))

    # Layout glue: activations are only reshaped (no data movement);
    # weight tensors are tiny so their transpose+reshape is negligible.
    x_flat = x_nchw.reshape(B, Cin, HW)
    w1_flat = jnp.transpose(w1_oihw, (0, 2, 3, 1)).reshape(C1, kkcin)
    w2_flat = jnp.transpose(w2_oihw, (0, 2, 3, 1)).reshape(C2, kkc1)
    b1_col = b1.reshape(C1, 1)
    b2_col = b2.reshape(C2, 1)

    kernel = functools.partial(_nonlinear_kernel, taps=tuple(taps), bb=bb, hw=HW)

    out_flat = pl.pallas_call(
        kernel,
        out_shape=jax.ShapeDtypeStruct((B, C2, HW), x_nchw.dtype),
        grid_spec=pltpu.PrefetchScalarGridSpec(
            num_scalar_prefetch=0,
            grid=(B // bb,),
            in_specs=[
                pl.BlockSpec((K * K, L), lambda g: (0, 0)),          # masks
                pl.BlockSpec((bb, Cin, HW), lambda g: (g, 0, 0)),    # x
                pl.BlockSpec((C1, kkcin), lambda g: (0, 0)),         # w1
                pl.BlockSpec((C1, 1), lambda g: (0, 0)),             # b1
                pl.BlockSpec((C2, kkc1), lambda g: (0, 0)),          # w2
                pl.BlockSpec((C2, 1), lambda g: (0, 0)),             # b2
            ],
            out_specs=pl.BlockSpec((bb, C2, HW), lambda g: (g, 0, 0)),
            scratch_shapes=[
                pltpu.VMEM((Cin, L), jnp.float32),
                pltpu.VMEM((kkcin, L), jnp.float32),
                pltpu.VMEM((kkc1, L), jnp.float32),
            ],
        ),
        compiler_params=pltpu.CompilerParams(
            dimension_semantics=("parallel",)),
    )(tap_mask, x_flat, w1_flat, b1_col, w2_flat, b2_col)

    return out_flat.reshape(B, C2, H, W)


def reference_forward(x, w1, b1, w2, b2):
    """Pure-JAX reference matching torch.nn.Conv2d semantics (NCHW / OIHW)."""
    dn = ('NCHW', 'OIHW', 'NCHW')
    y = lax.conv_general_dilated(x, w1, (1, 1), ((1, 1), (1, 1)),
                                 dimension_numbers=dn)
    y = y + b1[None, :, None, None]
    y = jnp.tanh(y)
    y = lax.conv_general_dilated(y, w2, (1, 1), ((1, 1), (1, 1)),
                                 dimension_numbers=dn)
    y = y + b2[None, :, None, None]
    return y


if __name__ == "__main__":
    # Small shapes consistent with the module's forward: (B, Cin, N, N).
    B, Cin, C1, C2, N, K = 2, 4, 8, 4, 16, 3

    key = jax.random.PRNGKey(0)
    kx, kw1, kb1, kw2, kb2 = jax.random.split(key, 5)

    x = jax.random.normal(kx, (B, Cin, N, N), jnp.float32)

    # Deterministic init mimicking torch's Conv2d Uniform(-1/sqrt(fan_in), +).
    bound1 = 1.0 / jnp.sqrt(Cin * K * K)
    w1 = jax.random.uniform(kw1, (C1, Cin, K, K), jnp.float32, -bound1, bound1)
    b1 = jax.random.uniform(kb1, (C1,), jnp.float32, -bound1, bound1)
    bound2 = 1.0 / jnp.sqrt(C1 * K * K)
    w2 = jax.random.uniform(kw2, (C2, C1, K, K), jnp.float32, -bound2, bound2)
    b2 = jax.random.uniform(kb2, (C2,), jnp.float32, -bound2, bound2)

    out = jax.block_until_ready(nonlinear_layer(x, w1, b1, w2, b2))
    ref = jax.block_until_ready(reference_forward(x, w1, b1, w2, b2))

    assert out.shape == (B, C2, N, N)
    assert jnp.allclose(out, ref, atol=1e-2, rtol=1e-2), "mismatch vs reference"

    print("KERNEL_OK")
</pallas_src>

<mosaic_0001>
module attributes {stable_mosaic.version = 11 : i64} {
  func.func @_nonlinear_kernel(%arg0: i32, %arg1: memref<9x512xf32, #tpu.memory_space<vmem>>, %arg2: memref<2x4x256xf32, #tpu.memory_space<vmem>>, %arg3: memref<8x36xf32, #tpu.memory_space<vmem>>, %arg4: memref<8x1xf32, #tpu.memory_space<vmem>>, %arg5: memref<4x72xf32, #tpu.memory_space<vmem>>, %arg6: memref<4x1xf32, #tpu.memory_space<vmem>>, %arg7: memref<2x4x256xf32, #tpu.memory_space<vmem>>, %arg8: memref<4x512xf32, #tpu.memory_space<vmem>>, %arg9: memref<36x512xf32, #tpu.memory_space<vmem>>, %arg10: memref<72x512xf32, #tpu.memory_space<vmem>>) attributes {dimension_semantics = [#tpu.dimension_semantics<parallel>], iteration_bounds = array<i64: 1>, scalar_prefetch = 0 : i64, scratch_operands = 3 : i64, tpu.core_type = #tpu.core_type<tc>, window_params = [{pipeline_mode = #tpu.pipeline_mode<synchronous>, transform_indices = @transform_0, window_bounds = array<i64: 9, 512>}, {transform_indices = @transform_1, window_bounds = array<i64: 2, 4, 256>}, {pipeline_mode = #tpu.pipeline_mode<synchronous>, transform_indices = @transform_2, window_bounds = array<i64: 8, 36>}, {pipeline_mode = #tpu.pipeline_mode<synchronous>, transform_indices = @transform_3, window_bounds = array<i64: 8, 1>}, {pipeline_mode = #tpu.pipeline_mode<synchronous>, transform_indices = @transform_4, window_bounds = array<i64: 4, 72>}, {pipeline_mode = #tpu.pipeline_mode<synchronous>, transform_indices = @transform_5, window_bounds = array<i64: 4, 1>}, {transform_indices = @transform_6, window_bounds = array<i64: 2, 4, 256>}]} {
    %c0 = arith.constant 0 : index
    %c0_0 = arith.constant 0 : index
    %c0_1 = arith.constant 0 : index
    %0 = vector.load %arg2[%c0, %c0_0, %c0_1] : memref<2x4x256xf32, #tpu.memory_space<vmem>>, vector<1x4x256xf32>
    %1 = vector.shape_cast %0 : vector<1x4x256xf32> to vector<4x256xf32>
    %c0_2 = arith.constant 0 : index
    %c0_3 = arith.constant 0 : index
    %2 = vector.load %arg8[%c0_2, %c0_3] : memref<4x512xf32, #tpu.memory_space<vmem>>, vector<4x256xf32>
    tpu.vector_store %arg8[%c0_2, %c0_3], %1 {strides = array<i32>} : memref<4x512xf32, #tpu.memory_space<vmem>>, vector<4x256xf32>,
    %c1 = arith.constant 1 : index
    %c0_4 = arith.constant 0 : index
    %c0_5 = arith.constant 0 : index
    %3 = vector.load %arg2[%c1, %c0_4, %c0_5] : memref<2x4x256xf32, #tpu.memory_space<vmem>>, vector<1x4x256xf32>
    %4 = vector.shape_cast %3 : vector<1x4x256xf32> to vector<4x256xf32>
    %c0_6 = arith.constant 0 : index
    %c256 = arith.constant 256 : index
    %5 = vector.load %arg8[%c0_6, %c256] : memref<4x512xf32, #tpu.memory_space<vmem>>, vector<4x256xf32>
    tpu.vector_store %arg8[%c0_6, %c256], %4 {strides = array<i32>} : memref<4x512xf32, #tpu.memory_space<vmem>>, vector<4x256xf32>,
    %c0_7 = arith.constant 0 : index
    %c0_8 = arith.constant 0 : index
    %6 = vector.load %arg8[%c0_7, %c0_8] : memref<4x512xf32, #tpu.memory_space<vmem>>, vector<4x512xf32>
    %c17_i32 = arith.constant 17 : i32
    %7 = tpu.dynamic_rotate %6 by %c17_i32 dim 1 : vector<4x512xf32>, i32 -> vector<4x512xf32>
    %c0_9 = arith.constant 0 : index
    %c0_10 = arith.constant 0 : index
    %8 = vector.load %arg1[%c0_9, %c0_10] : memref<9x512xf32, #tpu.memory_space<vmem>>, vector<1x512xf32>
    %9 = vector.broadcast %8 : vector<1x512xf32> to vector<4x512xf32>
    %10 = arith.mulf %7, %9 : vector<4x512xf32>
    %c0_11 = arith.constant 0 : index
    %c0_12 = arith.constant 0 : index
    %11 = vector.load %arg9[%c0_11, %c0_12] : memref<36x512xf32, #tpu.memory_space<vmem>>, vector<4x512xf32>
    tpu.vector_store %arg9[%c0_11, %c0_12], %10 {strides = array<i32>} : memref<36x512xf32, #tpu.memory_space<vmem>>, vector<4x512xf32>,
    %c16_i32 = arith.constant 16 : i32
    %12 = tpu.dynamic_rotate %6 by %c16_i32 dim 1 : vector<4x512xf32>, i32 -> vector<4x512xf32>
    %c1_13 = arith.constant 1 : index
    %c0_14 = arith.constant 0 : index
    %13 = vector.load %arg1[%c1_13, %c0_14] : memref<9x512xf32, #tpu.memory_space<vmem>>, vector<1x512xf32>
    %14 = vector.broadcast %13 : vector<1x512xf32> to vector<4x512xf32>
    %15 = arith.mulf %12, %14 : vector<4x512xf32>
    %c4 = arith.constant 4 : index
    %c0_15 = arith.constant 0 : index
    %16 = vector.load %arg9[%c4, %c0_15] : memref<36x512xf32, #tpu.memory_space<vmem>>, vector<4x512xf32>
    tpu.vector_store %arg9[%c4, %c0_15], %15 {strides = array<i32>} : memref<36x512xf32, #tpu.memory_space<vmem>>, vector<4x512xf32>,
    %c15_i32 = arith.constant 15 : i32
    %17 = tpu.dynamic_rotate %6 by %c15_i32 dim 1 : vector<4x512xf32>, i32 -> vector<4x512xf32>
    %c2 = arith.constant 2 : index
    %c0_16 = arith.constant 0 : index
    %18 = vector.load %arg1[%c2, %c0_16] : memref<9x512xf32, #tpu.memory_space<vmem>>, vector<1x512xf32>
    %19 = vector.broadcast %18 : vector<1x512xf32> to vector<4x512xf32>
    %20 = arith.mulf %17, %19 : vector<4x512xf32>
    %c8 = arith.constant 8 : index
    %c0_17 = arith.constant 0 : index
    %21 = vector.load %arg9[%c8, %c0_17] : memref<36x512xf32, #tpu.memory_space<vmem>>, vector<4x512xf32>
    tpu.vector_store %arg9[%c8, %c0_17], %20 {strides = array<i32>} : memref<36x512xf32, #tpu.memory_space<vmem>>, vector<4x512xf32>,
    %c1_i32 = arith.constant 1 : i32
    %22 = tpu.dynamic_rotate %6 by %c1_i32 dim 1 : vector<4x512xf32>, i32 -> vector<4x512xf32>
    %c3 = arith.constant 3 : index
    %c0_18 = arith.constant 0 : index
    %23 = vector.load %arg1[%c3, %c0_18] : memref<9x512xf32, #tpu.memory_space<vmem>>, vector<1x512xf32>
    %24 = vector.broadcast %23 : vector<1x512xf32> to vector<4x512xf32>
    %25 = arith.mulf %22, %24 : vector<4x512xf32>
    %c12 = arith.constant 12 : index
    %c0_19 = arith.constant 0 : index
    %26 = vector.load %arg9[%c12, %c0_19] : memref<36x512xf32, #tpu.memory_space<vmem>>, vector<4x512xf32>
    tpu.vector_store %arg9[%c12, %c0_19], %25 {strides = array<i32>} : memref<36x512xf32, #tpu.memory_space<vmem>>, vector<4x512xf32>,
    %c16 = arith.constant 16 : index
    %c0_20 = arith.constant 0 : index
    %27 = vector.load %arg9[%c16, %c0_20] : memref<36x512xf32, #tpu.memory_space<vmem>>, vector<4x512xf32>
    tpu.vector_store %arg9[%c16, %c0_20], %6 {strides = array<i32>} : memref<36x512xf32, #tpu.memory_space<vmem>>, vector<4x512xf32>,
    %c511_i32 = arith.constant 511 : i32
    %28 = tpu.dynamic_rotate %6 by %c511_i32 dim 1 : vector<4x512xf32>, i32 -> vector<4x512xf32>
    %c5 = arith.constant 5 : index
    %c0_21 = arith.constant 0 : index
    %29 = vector.load %arg1[%c5, %c0_21] : memref<9x512xf32, #tpu.memory_space<vmem>>, vector<1x512xf32>
    %30 = vector.broadcast %29 : vector<1x512xf32> to vector<4x512xf32>
    %31 = arith.mulf %28, %30 : vector<4x512xf32>
    %c20 = arith.constant 20 : index
    %c0_22 = arith.constant 0 : index
    %32 = vector.load %arg9[%c20, %c0_22] : memref<36x512xf32, #tpu.memory_space<vmem>>, vector<4x512xf32>
    tpu.vector_store %arg9[%c20, %c0_22], %31 {strides = array<i32>} : memref<36x512xf32, #tpu.memory_space<vmem>>, vector<4x512xf32>,
    %c497_i32 = arith.constant 497 : i32
    %33 = tpu.dynamic_rotate %6 by %c497_i32 dim 1 : vector<4x512xf32>, i32 -> vector<4x512xf32>
    %c6 = arith.constant 6 : index
    %c0_23 = arith.constant 0 : index
    %34 = vector.load %arg1[%c6, %c0_23] : memref<9x512xf32, #tpu.memory_space<vmem>>, vector<1x512xf32>
    %35 = vector.broadcast %34 : vector<1x512xf32> to vector<4x512xf32>
    %36 = arith.mulf %33, %35 : vector<4x512xf32>
    %c24 = arith.constant 24 : index
    %c0_24 = arith.constant 0 : index
    %37 = vector.load %arg9[%c24, %c0_24] : memref<36x512xf32, #tpu.memory_space<vmem>>, vector<4x512xf32>
    tpu.vector_store %arg9[%c24, %c0_24], %36 {strides = array<i32>} : memref<36x512xf32, #tpu.memory_space<vmem>>, vector<4x512xf32>,
    %c496_i32 = arith.constant 496 : i32
    %38 = tpu.dynamic_rotate %6 by %c496_i32 dim 1 : vector<4x512xf32>, i32 -> vector<4x512xf32>
    %c7 = arith.constant 7 : index
    %c0_25 = arith.constant 0 : index
    %39 = vector.load %arg1[%c7, %c0_25] : memref<9x512xf32, #tpu.memory_space<vmem>>, vector<1x512xf32>
    %40 = vector.broadcast %39 : vector<1x512xf32> to vector<4x512xf32>
    %41 = arith.mulf %38, %40 : vector<4x512xf32>
    %c28 = arith.constant 28 : index
    %c0_26 = arith.constant 0 : index
    %42 = vector.load %arg9[%c28, %c0_26] : memref<36x512xf32, #tpu.memory_space<vmem>>, vector<4x512xf32>
    tpu.vector_store %arg9[%c28, %c0_26], %41 {strides = array<i32>} : memref<36x512xf32, #tpu.memory_space<vmem>>, vector<4x512xf32>,
    %c495_i32 = arith.constant 495 : i32
    %43 = tpu.dynamic_rotate %6 by %c495_i32 dim 1 : vector<4x512xf32>, i32 -> vector<4x512xf32>
    %c8_27 = arith.constant 8 : index
    %c0_28 = arith.constant 0 : index
    %44 = vector.load %arg1[%c8_27, %c0_28] : memref<9x512xf32, #tpu.memory_space<vmem>>, vector<1x512xf32>
    %45 = vector.broadcast %44 : vector<1x512xf32> to vector<4x512xf32>
    %46 = arith.mulf %43, %45 : vector<4x512xf32>
    %c32 = arith.constant 32 : index
    %c0_29 = arith.constant 0 : index
    %47 = vector.load %arg9[%c32, %c0_29] : memref<36x512xf32, #tpu.memory_space<vmem>>, vector<4x512xf32>
    tpu.vector_store %arg9[%c32, %c0_29], %46 {strides = array<i32>} : memref<36x512xf32, #tpu.memory_space<vmem>>, vector<4x512xf32>,
    %c0_30 = arith.constant 0 : index
    %c0_31 = arith.constant 0 : index
    %48 = vector.load %arg3[%c0_30, %c0_31] : memref<8x36xf32, #tpu.memory_space<vmem>>, vector<8x36xf32>
    %c0_32 = arith.constant 0 : index
    %c0_33 = arith.constant 0 : index
    %49 = vector.load %arg9[%c0_32, %c0_33] : memref<36x512xf32, #tpu.memory_space<vmem>>, vector<36x512xf32>
    %cst = arith.constant dense<0.000000e+00> : vector<8x512xf32>
    %50 = tpu.matmul %48, %49, %cst {dimension_numbers = #tpu.dot_dimension_numbers<[1], [0], [0], [1], [0, 0, 1, 1], [], []>} : vector<8x36xf32>, vector<36x512xf32>, vector<8x512xf32> -> vector<8x512xf32>
    %c0_34 = arith.constant 0 : index
    %c0_35 = arith.constant 0 : index
    %51 = vector.load %arg4[%c0_34, %c0_35] : memref<8x1xf32, #tpu.memory_space<vmem>>, vector<8x1xf32>
    %52 = vector.broadcast %51 : vector<8x1xf32> to vector<8x512xf32>
    %53 = arith.addf %50, %52 : vector<8x512xf32>
    %54 = math.tanh %53 : vector<8x512xf32>
    %c17_i32_36 = arith.constant 17 : i32
    %55 = tpu.dynamic_rotate %54 by %c17_i32_36 dim 1 : vector<8x512xf32>, i32 -> vector<8x512xf32>
    %c0_37 = arith.constant 0 : index
    %c0_38 = arith.constant 0 : index
    %56 = vector.load %arg1[%c0_37, %c0_38] : memref<9x512xf32, #tpu.memory_space<vmem>>, vector<1x512xf32>
    %57 = vector.broadcast %56 : vector<1x512xf32> to vector<8x512xf32>
    %58 = arith.mulf %55, %57 : vector<8x512xf32>
    %c0_39 = arith.constant 0 : index
    %c0_40 = arith.constant 0 : index
    %59 = vector.load %arg10[%c0_39, %c0_40] : memref<72x512xf32, #tpu.memory_space<vmem>>, vector<8x512xf32>
    tpu.vector_store %arg10[%c0_39, %c0_40], %58 {strides = array<i32>} : memref<72x512xf32, #tpu.memory_space<vmem>>, vector<8x512xf32>,
    %c16_i32_41 = arith.constant 16 : i32
    %60 = tpu.dynamic_rotate %54 by %c16_i32_41 dim 1 : vector<8x512xf32>, i32 -> vector<8x512xf32>
    %c1_42 = arith.constant 1 : index
    %c0_43 = arith.constant 0 : index
    %61 = vector.load %arg1[%c1_42, %c0_43] : memref<9x512xf32, #tpu.memory_space<vmem>>, vector<1x512xf32>
    %62 = vector.broadcast %61 : vector<1x512xf32> to vector<8x512xf32>
    %63 = arith.mulf %60, %62 : vector<8x512xf32>
    %c8_44 = arith.constant 8 : index
    %c0_45 = arith.constant 0 : index
    %64 = vector.load %arg10[%c8_44, %c0_45] : memref<72x512xf32, #tpu.memory_space<vmem>>, vector<8x512xf32>
    tpu.vector_store %arg10[%c8_44, %c0_45], %63 {strides = array<i32>} : memref<72x512xf32, #tpu.memory_space<vmem>>, vector<8x512xf32>,
    %c15_i32_46 = arith.constant 15 : i32
    %65 = tpu.dynamic_rotate %54 by %c15_i32_46 dim 1 : vector<8x512xf32>, i32 -> vector<8x512xf32>
    %c2_47 = arith.constant 2 : index
    %c0_48 = arith.constant 0 : index
    %66 = vector.load %arg1[%c2_47, %c0_48] : memref<9x512xf32, #tpu.memory_space<vmem>>, vector<1x512xf32>
    %67 = vector.broadcast %66 : vector<1x512xf32> to vector<8x512xf32>
    %68 = arith.mulf %65, %67 : vector<8x512xf32>
    %c16_49 = arith.constant 16 : index
    %c0_50 = arith.constant 0 : index
    %69 = vector.load %arg10[%c16_49, %c0_50] : memref<72x512xf32, #tpu.memory_space<vmem>>, vector<8x512xf32>
    tpu.vector_store %arg10[%c16_49, %c0_50], %68 {strides = array<i32>} : memref<72x512xf32, #tpu.memory_space<vmem>>, vector<8x512xf32>,
    %c1_i32_51 = arith.constant 1 : i32
    %70 = tpu.dynamic_rotate %54 by %c1_i32_51 dim 1 : vector<8x512xf32>, i32 -> vector<8x512xf32>
    %c3_52 = arith.constant 3 : index
    %c0_53 = arith.constant 0 : index
    %71 = vector.load %arg1[%c3_52, %c0_53] : memref<9x512xf32, #tpu.memory_space<vmem>>, vector<1x512xf32>
    %72 = vector.broadcast %71 : vector<1x512xf32> to vector<8x512xf32>
    %73 = arith.mulf %70, %72 : vector<8x512xf32>
    %c24_54 = arith.constant 24 : index
    %c0_55 = arith.constant 0 : index
    %74 = vector.load %arg10[%c24_54, %c0_55] : memref<72x512xf32, #tpu.memory_space<vmem>>, vector<8x512xf32>
    tpu.vector_store %arg10[%c24_54, %c0_55], %73 {strides = array<i32>} : memref<72x512xf32, #tpu.memory_space<vmem>>, vector<8x512xf32>,
    %c32_56 = arith.constant 32 : index
    %c0_57 = arith.constant 0 : index
    %75 = vector.load %arg10[%c32_56, %c0_57] : memref<72x512xf32, #tpu.memory_space<vmem>>, vector<8x512xf32>
    tpu.vector_store %arg10[%c32_56, %c0_57], %54 {strides = array<i32>} : memref<72x512xf32, #tpu.memory_space<vmem>>, vector<8x512xf32>,
    %c511_i32_58 = arith.constant 511 : i32
    %76 = tpu.dynamic_rotate %54 by %c511_i32_58 dim 1 : vector<8x512xf32>, i32 -> vector<8x512xf32>
    %c5_59 = arith.constant 5 : index
    %c0_60 = arith.constant 0 : index
    %77 = vector.load %arg1[%c5_59, %c0_60] : memref<9x512xf32, #tpu.memory_space<vmem>>, vector<1x512xf32>
    %78 = vector.broadcast %77 : vector<1x512xf32> to vector<8x512xf32>
    %79 = arith.mulf %76, %78 : vector<8x512xf32>
    %c40 = arith.constant 40 : index
    %c0_61 = arith.constant 0 : index
    %80 = vector.load %arg10[%c40, %c0_61] : memref<72x512xf32, #tpu.memory_space<vmem>>, vector<8x512xf32>
    tpu.vector_store %arg10[%c40, %c0_61], %79 {strides = array<i32>} : memref<72x512xf32, #tpu.memory_space<vmem>>, vector<8x512xf32>,
    %c497_i32_62 = arith.constant 497 : i32
    %81 = tpu.dynamic_rotate %54 by %c497_i32_62 dim 1 : vector<8x512xf32>, i32 -> vector<8x512xf32>
    %c6_63 = arith.constant 6 : index
    %c0_64 = arith.constant 0 : index
    %82 = vector.load %arg1[%c6_63, %c0_64] : memref<9x512xf32, #tpu.memory_space<vmem>>, vector<1x512xf32>
    %83 = vector.broadcast %82 : vector<1x512xf32> to vector<8x512xf32>
    %84 = arith.mulf %81, %83 : vector<8x512xf32>
    %c48 = arith.constant 48 : index
    %c0_65 = arith.constant 0 : index
    %85 = vector.load %arg10[%c48, %c0_65] : memref<72x512xf32, #tpu.memory_space<vmem>>, vector<8x512xf32>
    tpu.vector_store %arg10[%c48, %c0_65], %84 {strides = array<i32>} : memref<72x512xf32, #tpu.memory_space<vmem>>, vector<8x512xf32>,
    %c496_i32_66 = arith.constant 496 : i32
    %86 = tpu.dynamic_rotate %54 by %c496_i32_66 dim 1 : vector<8x512xf32>, i32 -> vector<8x512xf32>
    %c7_67 = arith.constant 7 : index
    %c0_68 = arith.constant 0 : index
    %87 = vector.load %arg1[%c7_67, %c0_68] : memref<9x512xf32, #tpu.memory_space<vmem>>, vector<1x512xf32>
    %88 = vector.broadcast %87 : vector<1x512xf32> to vector<8x512xf32>
    %89 = arith.mulf %86, %88 : vector<8x512xf32>
    %c56 = arith.constant 56 : index
    %c0_69 = arith.constant 0 : index
    %90 = vector.load %arg10[%c56, %c0_69] : memref<72x512xf32, #tpu.memory_space<vmem>>, vector<8x512xf32>
    tpu.vector_store %arg10[%c56, %c0_69], %89 {strides = array<i32>} : memref<72x512xf32, #tpu.memory_space<vmem>>, vector<8x512xf32>,
    %c495_i32_70 = arith.constant 495 : i32
    %91 = tpu.dynamic_rotate %54 by %c495_i32_70 dim 1 : vector<8x512xf32>, i32 -> vector<8x512xf32>
    %c8_71 = arith.constant 8 : index
    %c0_72 = arith.constant 0 : index
    %92 = vector.load %arg1[%c8_71, %c0_72] : memref<9x512xf32, #tpu.memory_space<vmem>>, vector<1x512xf32>
    %93 = vector.broadcast %92 : vector<1x512xf32> to vector<8x512xf32>
    %94 = arith.mulf %91, %93 : vector<8x512xf32>
    %c64 = arith.constant 64 : index
    %c0_73 = arith.constant 0 : index
    %95 = vector.load %arg10[%c64, %c0_73] : memref<72x512xf32, #tpu.memory_space<vmem>>, vector<8x512xf32>
    tpu.vector_store %arg10[%c64, %c0_73], %94 {strides = array<i32>} : memref<72x512xf32, #tpu.memory_space<vmem>>, vector<8x512xf32>,
    %c0_74 = arith.constant 0 : index
    %c0_75 = arith.constant 0 : index
    %96 = vector.load %arg5[%c0_74, %c0_75] : memref<4x72xf32, #tpu.memory_space<vmem>>, vector<4x72xf32>
    %c0_76 = arith.constant 0 : index
    %c0_77 = arith.constant 0 : index
    %97 = vector.load %arg10[%c0_76, %c0_77] : memref<72x512xf32, #tpu.memory_space<vmem>>, vector<72x512xf32>
    %cst_78 = arith.constant dense<0.000000e+00> : vector<4x512xf32>
    %98 = tpu.matmul %96, %97, %cst_78 {dimension_numbers = #tpu.dot_dimension_numbers<[1], [0], [0], [1], [0, 0, 1, 1], [], []>} : vector<4x72xf32>, vector<72x512xf32>, vector<4x512xf32> -> vector<4x512xf32>
    %c0_79 = arith.constant 0 : index
    %c0_80 = arith.constant 0 : index
    %99 = vector.load %arg6[%c0_79, %c0_80] : memref<4x1xf32, #tpu.memory_space<vmem>>, vector<4x1xf32>
    %100 = vector.broadcast %99 : vector<4x1xf32> to vector<4x512xf32>
    %101 = arith.addf %98, %100 : vector<4x512xf32>
    %102 = vector.extract_strided_slice %101 {offsets = [0, 0], sizes = [4, 256], strides = [1, 1]} : vector<4x512xf32> to vector<4x256xf32>
    %c0_81 = arith.constant 0 : index
    %c0_82 = arith.constant 0 : index
    %c0_83 = arith.constant 0 : index
    %103 = vector.load %arg7[%c0_81, %c0_82, %c0_83] : memref<2x4x256xf32, #tpu.memory_space<vmem>>, vector<1x4x256xf32>
    %104 = vector.shape_cast %103 : vector<1x4x256xf32> to vector<4x256xf32>
    %105 = vector.shape_cast %102 : vector<4x256xf32> to vector<1x4x256xf32>
    tpu.vector_store %arg7[%c0_81, %c0_82, %c0_83], %105 {strides = array<i32>} : memref<2x4x256xf32, #tpu.memory_space<vmem>>, vector<1x4x256xf32>,
    %106 = vector.extract_strided_slice %101 {offsets = [0, 256], sizes = [4, 256], strides = [1, 1]} : vector<4x512xf32> to vector<4x256xf32>
    %c1_84 = arith.constant 1 : index
    %c0_85 = arith.constant 0 : index
    %c0_86 = arith.constant 0 : index
    %107 = vector.load %arg7[%c1_84, %c0_85, %c0_86] : memref<2x4x256xf32, #tpu.memory_space<vmem>>, vector<1x4x256xf32>
    %108 = vector.shape_cast %107 : vector<1x4x256xf32> to vector<4x256xf32>
    %109 = vector.shape_cast %106 : vector<4x256xf32> to vector<1x4x256xf32>
    tpu.vector_store %arg7[%c1_84, %c0_85, %c0_86], %109 {strides = array<i32>} : memref<2x4x256xf32, #tpu.memory_space<vmem>>, vector<1x4x256xf32>,
    return
  }
  func.func @transform_0(%arg0: i32) -> (i32, i32) {
    %c0_i32 = arith.constant 0 : i32
    %c0_i32_0 = arith.constant 0 : i32
    %c0_i32_1 = arith.constant 0 : i32
    return %c0_i32, %c0_i32_0 : i32, i32
  }
  func.func @transform_1(%arg0: i32) -> (i32, i32, i32) {
    %c0_i32 = arith.constant 0 : i32
    %c0_i32_0 = arith.constant 0 : i32
    %c0_i32_1 = arith.constant 0 : i32
    return %arg0, %c0_i32, %c0_i32_0 : i32, i32, i32
  }
  func.func @transform_2(%arg0: i32) -> (i32, i32) {
    %c0_i32 = arith.constant 0 : i32
    %c0_i32_0 = arith.constant 0 : i32
    %c0_i32_1 = arith.constant 0 : i32
    return %c0_i32, %c0_i32_0 : i32, i32
  }
  func.func @transform_3(%arg0: i32) -> (i32, i32) {
    %c0_i32 = arith.constant 0 : i32
    %c0_i32_0 = arith.constant 0 : i32
    %c0_i32_1 = arith.constant 0 : i32
    return %c0_i32, %c0_i32_0 : i32, i32
  }
  func.func @transform_4(%arg0: i32) -> (i32, i32) {
    %c0_i32 = arith.constant 0 : i32
    %c0_i32_0 = arith.constant 0 : i32
    %c0_i32_1 = arith.constant 0 : i32
    return %c0_i32, %c0_i32_0 : i32, i32
  }
  func.func @transform_5(%arg0: i32) -> (i32, i32) {
    %c0_i32 = arith.constant 0 : i32
    %c0_i32_0 = arith.constant 0 : i32
    %c0_i32_1 = arith.constant 0 : i32
    return %c0_i32, %c0_i32_0 : i32, i32
  }
  func.func @transform_6(%arg0: i32) -> (i32, i32, i32) {
    %c0_i32 = arith.constant 0 : i32
    %c0_i32_0 = arith.constant 0 : i32
    %c0_i32_1 = arith.constant 0 : i32
    return %arg0, %c0_i32, %c0_i32_0 : i32, i32, i32
  }
}

</mosaic_0001>

<bundles_post_ra>
// kernel: tpu_custom_call.1
= control target key start
LH: loop header
LB: loop body
LE: loop exit
PB: predicated region body
PF: predicated region fallthrough
CT: control target
= control target key end

     0   :  { %11 = vsyncpa [#allocation6], 0  ;;  %s1798_s0 = inlined_call_operand.hbm [shape: f32[9,512], index: 0, kind: input, shape index: {}]   ;;  %s1799_s1 = inlined_call_operand.vmem [shape: f32[2,4,256], index: 1, kind: input, shape index: {}]   ;;  %s1800_s2 = inlined_call_operand.hbm [shape: f32[8,36], index: 2, kind: input, shape index: {}]   ;;  %s1801_s3 = inlined_call_operand.vmem [shape: f32[8,1], index: 3, kind: input, shape index: {}]   ;;  %s1802_s4 = inlined_call_operand.vmem [shape: f32[4,72], index: 4, kind: input, shape index: {}]   ;;  %s1803_s5 = inlined_call_operand.vmem [shape: f32[4,1], index: 5, kind: input, shape index: {}]   ;;  %s1804_s6 = inlined_call_operand.hbm [shape: f32[2,4,256], index: 6, kind: output, shape index: {}]  }
   0x1   :  { %12 = vsyncpa [#allocation9], 0 }
   0x2   :  { %13 = vsyncpa [#allocation7], 0  ;;  %s1373_s21 = smov [#allocation5]   ;;  %s1301_s25 = scalar_lea.hbm %s1798_s0, 1024 }
   0x3   :  { %s19_s22 = sshll.u32 %s1373_s21, 4  ;;  %p1302_p0 = scmp.ne.s32.totalorder %s1798_s0, %s1301_s25  ;;  %s20_s22 = int_to_ptr.vmem [resolvable:$true] %s19_s22 }
   0x4   :  { %p1305_p1 = scmp.lt.u32.totalorder %s1301_s25, %s1798_s0 }
   0x6   :  { %p1307_p2 = pnand %p1305_p1, %p1302_p0 }
   0x8   :  { %1310 = shalt.err (!%p1307_p2)
}
   0x9   :  { %s1311_s30 = scalar_lea.vmem %s20_s22, 1024  ;;  %p1316_p4 = scmp.lt.s32.totalorder %s20_s22, %s20_s22 }
   0xa   :  { %p1312_p3 = scmp.ne.s32.totalorder %s20_s22, %s1311_s30  ;;  %p1317_p5 = scmp.lt.s32.totalorder %s1311_s30, %s1311_s30 }
   0xc   :  { %p1318_p6 = por %p1317_p5, %p1316_p4 }
   0xe   :  { %p1319_p7 = pnand %p1318_p6, %p1312_p3 }
  0x10   :  { %1322 = shalt.err (!%p1319_p7)
}
  0x11   :  { %s1374_s7 = smov 512   ;;  %s1375_s8 = smov 32  }
  0x12   :  { %25 = dma.hbm_to_vmem [thread:$0]  %s1798_s0, 1024, %s20_s22, [#allocation6], %s1374_s7, %s1374_s7, %s1375_s8  }
  0x13   :  { %s1376_s11 = smov [#allocation8]   ;;  %s1323_s15 = scalar_lea.hbm %s1800_s2, 128 }
  0x14   :  { %s34_s12 = sshll.u32 %s1376_s11, 4  ;;  %p1324_p8 = scmp.ne.s32.totalorder %s1800_s2, %s1323_s15  ;;  %s35_s12 = int_to_ptr.vmem [resolvable:$true] %s34_s12 }
  0x15   :  { %p1327_p9 = scmp.lt.u32.totalorder %s1323_s15, %s1800_s2 }
  0x17   :  { %p1329_p10 = pnand %p1327_p9, %p1324_p8 }
  0x19   :  { %1332 = shalt.err (!%p1329_p10)
}
  0x1a   :  { %s1333_s20 = scalar_lea.vmem %s35_s12, 128  ;;  %p1338_p12 = scmp.lt.s32.totalorder %s35_s12, %s35_s12 }
  0x1b   :  { %p1334_p11 = scmp.ne.s32.totalorder %s35_s12, %s1333_s20  ;;  %p1339_p13 = scmp.lt.s32.totalorder %s1333_s20, %s1333_s20 }
  0x1d   :  { %p1340_p0 = por %p1339_p13, %p1338_p12 }
  0x1f   :  { %p1341_p1 = pnand %p1340_p0, %p1334_p11 }
  0x21   :  { %1344 = shalt.err (!%p1341_p1)
}
  0x22   :  { %37 = dma.hbm_to_vmem [thread:$0]  %s1800_s2, 128, %s35_s12, [#allocation9]  }
  0x23   :  { %1367 = dma.done.wait [#allocation6], 1024  }
  0x24   :  { %1368 = vsyncadd [#allocation6], 4294966272 }
  0x25   :  { %1369 = dma.done.wait [#allocation9], 128  }
  0x26   :  { %1370 = vsyncadd [#allocation9], 4294967168  ;;  %v1216_v0 = vld [vmem:[%s1799_s1 + $0x8] sm:$0xff]  ;;  %v50_v1 = vld [vmem:[%s1799_s1] sm:$0xff]  ;;  %s1377_s26 = smov 16   ;;  %s1378_s2 = smov 1   ;;  %v71_v7 = vlaneseq }
  0x27   :  { %112 = vrot.lane.b32.xlu1 %v1216_v0, %s1377_s26  ;;  %266 = vst [vmem:[#allocation3 + $0x50] sm:$0xf] %v1216_v0  ;;  %108 = vrot.lane.b32.xlu0 %v50_v1, %s1377_s26  ;;  %264 = vst [vmem:[#allocation3 + $0x40] sm:$0xf] %v50_v1  ;;  %v60_v2 = vcombine.high %v1216_v0, %v1216_v0  ;;  %v59_v3 = vcombine.high %v50_v1, %v50_v1  ;;  %s1379_s1 = smov 17   ;;  %s1380_s27 = smov 15  }
  0x28   :  { %s1381_s28 = smov 127   ;;  %s1382_s29 = smov 112   ;;  %v1385_v4 = vmov 0.0   ;;  %v489_v5 = vld [vmem:[%s1801_s3] sm:$0xff]  ;;  %v1386_v6 = vmov 0   ;;  %v81_v8 = vshrl.u32 %v71_v7, 7 }
  0x29   :  { %267 = vst [vmem:[#allocation3 + $0x58] sm:$0xf] %v60_v2  ;;  %265 = vst [vmem:[#allocation3 + $0x48] sm:$0xf] %v59_v3  ;;  %s1383_s30 = smov 113   ;;  %s1384_s7 = smov 111   ;;  %576 = vmatprep.mubr.f32.mxu0 %v1385_v4  ;;  %647 = vmatprep.mubr.f32.mxu1 %v1385_v4 }
  0x2a   :  { %1290 = vset.pattern.permute.xlu0 %v1386_v6  ;;  %v1492_v9 = vand.u32 127, %v71_v7  ;;  %v1494_v10 = vsub.s32 0, %v81_v8  ;;  %v1496_v11 = vsub.s32 3, %v81_v8  ;;  %v122_v12 = vld [vmem:[#allocation5 + $0x1] ss:$8 sm:$0xf] }
  0x2b   :  { %114 = vrot.lane.b32.xlu1 %v60_v2, %s1377_s26  ;;  %208 = vrot.lane.b32.xlu0 %v50_v1, %s1378_s2  ;;  %v1498_v15 = vsub.s32 1, %v81_v8  ;;  %v1500_v16 = vsub.s32 2, %v81_v8  ;;  %v222_v19 = vld [vmem:[#allocation5 + $0x3] ss:$8 sm:$0xf]  ;;  %vm499_vm8 = vcmask 1043456  }
  0x2c   :  { %vm116_vm0 = vcmp.lt.s32.totalorder %v1492_v9, 16  ;;  %v127_v17 = vrot.slane %v122_v12, %v1494_v10  ;;  %v139_v18 = vrot.slane %v122_v12, %v1496_v11  ;;  %vm216_vm1 = vcmp.lt.s32.totalorder %v1492_v9, 1  ;;  %v78_v42 = vld [vmem:[#allocation5] ss:$8 sm:$0xf] }
  0x2d   :  { %v231_v24 = vrot.slane %v222_v19, %v1498_v15  ;;  %v131_v27 = vrot.slane %v122_v12, %v1498_v15  ;;  %v135_v28 = vrot.slane %v122_v12, %v1500_v16  ;;  %v227_v33 = vrot.slane %v222_v19, %v1494_v10 }
  0x2e   :  { %v235_v37 = vrot.slane %v222_v19, %v1500_v16  ;;  %v239_v41 = vrot.slane %v222_v19, %v1496_v11  ;;  %vm73_vm2 = vcmp.lt.s32.totalorder %v1492_v9, 17  ;;  %v87_v54 = vrot.slane %v78_v42, %v1498_v15 }
  0x2f   :  { %210 = vrot.lane.b32.xlu1 %v59_v3, %s1378_s2  ;;  %110 = vrot.lane.b32.xlu0 %v59_v3, %s1377_s26  ;;  %v83_v62 = vrot.slane %v78_v42, %v1494_v10  ;;  %v91_v63 = vrot.slane %v78_v42, %v1500_v16  ;;  %vm172_vm3 = vcmp.lt.s32.totalorder %v1492_v9, 15  ;;  %vm276_vm4 = vcmp.lt.s32.totalorder %v1492_v9, 127 }
  0x30   :  { %vm376_vm5 = vcmp.lt.s32.totalorder %v1492_v9, 112  ;;  %vm332_vm6 = vcmp.lt.s32.totalorder %v1492_v9, 113  ;;  %vm432_vm7 = vcmp.lt.s32.totalorder %v1492_v9, 111  ;;  %vm495_vm9 = vcmask 293888  }
  0x31   :  { %vm1041_vm10 = vcmask 588800  }
  0x33   :  { %214 = vrot.lane.b32.xlu1 %v60_v2, %s1378_s2  ;;  %212 = vrot.lane.b32.xlu0 %v1216_v0, %s1378_s2 }
  0x37   :  { %65 = vrot.lane.b32.xlu1 %v59_v3, %s1379_s1  ;;  %63 = vrot.lane.b32.xlu0 %v50_v1, %s1379_s1 }
  0x3b   :  { %69 = vrot.lane.b32.xlu1 %v60_v2, %s1379_s1  ;;  %67 = vrot.lane.b32.xlu0 %v1216_v0, %s1379_s1 }
  0x3f   :  { %166 = vrot.lane.b32.xlu1 %v59_v3, %s1380_s27  ;;  %164 = vrot.lane.b32.xlu0 %v50_v1, %s1380_s27 }
  0x43   :  { %170 = vrot.lane.b32.xlu1 %v60_v2, %s1380_s27  ;;  %168 = vrot.lane.b32.xlu0 %v1216_v0, %s1380_s27 }
  0x47   :  { %270 = vrot.lane.b32.xlu1 %v59_v3, %s1381_s28  ;;  %268 = vrot.lane.b32.xlu0 %v50_v1, %s1381_s28 }
  0x4b   :  { %274 = vrot.lane.b32.xlu1 %v60_v2, %s1381_s28  ;;  %272 = vrot.lane.b32.xlu0 %v1216_v0, %s1381_s28 }
  0x4f   :  { %370 = vrot.lane.b32.xlu1 %v59_v3, %s1382_s29  ;;  %368 = vrot.lane.b32.xlu0 %v50_v1, %s1382_s29 }
  0x53   :  { %374 = vrot.lane.b32.xlu1 %v60_v2, %s1382_s29  ;;  %372 = vrot.lane.b32.xlu0 %v1216_v0, %s1382_s29 }
  0x57   :  { %326 = vrot.lane.b32.xlu1 %v59_v3, %s1383_s30  ;;  %324 = vrot.lane.b32.xlu0 %v50_v1, %s1383_s30 }
  0x5b   :  { %330 = vrot.lane.b32.xlu1 %v60_v2, %s1383_s30  ;;  %328 = vrot.lane.b32.xlu0 %v1216_v0, %s1383_s30 }
  0x5f   :  { %426 = vrot.lane.b32.xlu1 %v59_v3, %s1384_s7  ;;  %424 = vrot.lane.b32.xlu0 %v50_v1, %s1384_s7  ;;  %v178_v1 = vld [vmem:[#allocation5 + $0x2] ss:$8 sm:$0xf] }
  0x63   :  { %430 = vrot.lane.b32.xlu1 %v60_v2, %s1384_s7  ;;  %428 = vrot.lane.b32.xlu0 %v1216_v0, %s1384_s7  ;;  %v95_v0 = vrot.slane %v78_v42, %v1496_v11 }
  0x67   :  { %492 = vperm.xlu0 %1290, %v489_v5  }
  0x99   :  { %v113_v13 = vpop.permute.xlu1 %112  ;;  %v109_v14 = vpop.permute.xlu0 %108 }
  0x9d   :  { %v115_v20 = vpop.permute.xlu1 %114  ;;  %v209_v21 = vpop.permute.xlu0 %208 }
  0x9e   :  { %v117_v22 = vsel %vm116_vm0, %v113_v13, %v115_v20  ;;  %v120_v23 = vsel %vm116_vm0, %v115_v20, %v109_v14 }
  0x9f   :  { %v144_v25 = vmul.f32 %v127_v17, %v120_v23  ;;  %v147_v26 = vmul.f32 %v139_v18, %v117_v22  ;;  %v191_v22 = vrot.slane %v178_v1, %v1500_v16  ;;  %v195_v23 = vrot.slane %v178_v1, %v1496_v11 }
  0xa1   :  { %v152_v29 = vrot.slane %v144_v25, 4  ;;  %v155_v30 = vrot.slane %v147_v26, 4  ;;  %v211_v31 = vpop.permute.xlu1 %210  ;;  %v111_v32 = vpop.permute.xlu0 %110 }
  0xa2   :  { %v219_v34 = vsel %vm216_vm1, %v209_v21, %v211_v31  ;;  %v118_v35 = vsel %vm116_vm0, %v111_v32, %v113_v13  ;;  %v119_v36 = vsel %vm116_vm0, %v109_v14, %v111_v32  ;;  %v187_v14 = vrot.slane %v178_v1, %v1498_v15 }
  0xa3   :  { %160 = vst [vmem:[#allocation3] sm:$0xf0] %v152_v29  ;;  %163 = vst [vmem:[#allocation3 + $0x18] sm:$0xf0] %v155_v30  ;;  %v245_v38 = vmul.f32 %v231_v24, %v219_v34  ;;  %v145_v39 = vmul.f32 %v131_v27, %v119_v36  ;;  %v146_v40 = vmul.f32 %v135_v28, %v118_v35 }
  0xa4   :  { %v282_v24 = vld [vmem:[#allocation5 + $0x5] ss:$8 sm:$0xf] }
  0xa5   :  { %v253_v43 = vrot.slane %v245_v38, 4  ;;  %v153_v44 = vrot.slane %v145_v39, 4  ;;  %v154_v45 = vrot.slane %v146_v40, 4  ;;  %v215_v46 = vpop.permute.xlu1 %214  ;;  %v213_v47 = vpop.permute.xlu0 %212  ;;  %v299_v38 = vrot.slane %v282_v24, %v1496_v11 }
  0xa6   :  { %v220_v48 = vsel %vm216_vm1, %v215_v46, %v209_v21  ;;  %v217_v49 = vsel %vm216_vm1, %v213_v47, %v215_v46  ;;  %v218_v50 = vsel %vm216_vm1, %v211_v31, %v213_v47  ;;  %v183_v21 = vrot.slane %v178_v1, %v1494_v10 }
  0xa7   :  { %261 = vst [vmem:[#allocation3 + $0x28] sm:$0xf0] %v253_v43  ;;  %161 = vst [vmem:[#allocation3 + $0x8] sm:$0xf0] %v153_v44  ;;  %v244_v51 = vmul.f32 %v227_v33, %v220_v48  ;;  %v246_v52 = vmul.f32 %v235_v37, %v218_v50  ;;  %v247_v53 = vmul.f32 %v239_v41, %v217_v49 }
  0xa8   :  { %162 = vst [vmem:[#allocation3 + $0x10] sm:$0xf0] %v154_v45  ;;  %v287_v33 = vrot.slane %v282_v24, %v1494_v10  ;;  %v291_v39 = vrot.slane %v282_v24, %v1498_v15  ;;  %v295_v40 = vrot.slane %v282_v24, %v1500_v16  ;;  %v382_v43 = vld [vmem:[#allocation5 + $0x7] ss:$8 sm:$0xf] }
  0xa9   :  { %v252_v55 = vrot.slane %v244_v51, 4  ;;  %v254_v56 = vrot.slane %v246_v52, 4  ;;  %v255_v57 = vrot.slane %v247_v53, 4  ;;  %v66_v58 = vpop.permute.xlu1 %65  ;;  %v64_v59 = vpop.permute.xlu0 %63 }
  0xaa   :  { %v76_v60 = vsel %vm73_vm2, %v64_v59, %v66_v58 }
  0xab   :  { %260 = vst [vmem:[#allocation3 + $0x20] sm:$0xf0] %v252_v55  ;;  %262 = vst [vmem:[#allocation3 + $0x30] sm:$0xf0] %v254_v56  ;;  %v101_v61 = vmul.f32 %v87_v54, %v76_v60  ;;  %v387_v54 = vrot.slane %v382_v43, %v1494_v10 }
  0xac   :  { %263 = vst [vmem:[#allocation3 + $0x38] sm:$0xf0] %v255_v57 }
  0xad   :  { %105 = vst [vmem:[#allocation3 + $0x8] sm:$0xf] %v101_v61  ;;  %v70_v2 = vpop.permute.xlu1 %69  ;;  %v68_v3 = vpop.permute.xlu0 %67 }
  0xae   :  { %v77_v5 = vsel %vm73_vm2, %v70_v2, %v64_v59  ;;  %v74_v6 = vsel %vm73_vm2, %v68_v3, %v70_v2  ;;  %v75_v7 = vsel %vm73_vm2, %v66_v58, %v68_v3 }
  0xaf   :  { %v100_v8 = vmul.f32 %v83_v62, %v77_v5  ;;  %v102_v12 = vmul.f32 %v91_v63, %v75_v7  ;;  %v103_v13 = vmul.f32 %v95_v0, %v74_v6 }
  0xb1   :  { %104 = vst [vmem:[#allocation3] sm:$0xf] %v100_v8  ;;  %106 = vst [vmem:[#allocation3 + $0x10] sm:$0xf] %v102_v12  ;;  %v167_v17 = vpop.permute.xlu1 %166  ;;  %v165_v18 = vpop.permute.xlu0 %164  ;;  %v399_v8 = vrot.slane %v382_v43, %v1496_v11  ;;  %v391_v12 = vrot.slane %v382_v43, %v1498_v15 }
  0xb2   :  { %107 = vst [vmem:[#allocation3 + $0x18] sm:$0xf] %v103_v13  ;;  %v175_v19 = vsel %vm172_vm3, %v165_v18, %v167_v17  ;;  %v395_v13 = vrot.slane %v382_v43, %v1500_v16 }
  0xb3   :  { %v201_v20 = vmul.f32 %v187_v14, %v175_v19  ;;  %v338_v14 = vld [vmem:[#allocation5 + $0x6] ss:$8 sm:$0xf] }
  0xb4   :  { %v470_v41 = vld [vmem:[#allocation3 + $0x8] sm:$0xff] }
  0xb5   :  { %205 = vst [vmem:[#allocation3 + $0x28] sm:$0xf] %v201_v20  ;;  %v171_v25 = vpop.permute.xlu1 %170  ;;  %v169_v26 = vpop.permute.xlu0 %168 }
  0xb6   :  { %v176_v27 = vsel %vm172_vm3, %v171_v25, %v165_v18  ;;  %v173_v28 = vsel %vm172_vm3, %v169_v26, %v171_v25  ;;  %v174_v29 = vsel %vm172_vm3, %v167_v17, %v169_v26  ;;  %v343_v26 = vrot.slane %v338_v14, %v1494_v10 }
  0xb7   :  { %v200_v30 = vmul.f32 %v183_v21, %v176_v27  ;;  %v202_v31 = vmul.f32 %v191_v22, %v174_v29  ;;  %v203_v32 = vmul.f32 %v195_v23, %v173_v28 }
  0xb8   :  { %v469_v55 = vld [vmem:[#allocation3] sm:$0xff]  ;;  %v471_v2 = vld [vmem:[#allocation3 + $0x10] sm:$0xff] }
  0xb9   :  { %204 = vst [vmem:[#allocation3 + $0x20] sm:$0xf] %v200_v30  ;;  %206 = vst [vmem:[#allocation3 + $0x30] sm:$0xf] %v202_v31  ;;  %v271_v34 = vpop.permute.xlu1 %270  ;;  %v269_v35 = vpop.permute.xlu0 %268  ;;  %v472_v1 = vld [vmem:[#allocation3 + $0x18] sm:$0xff] }
  0xba   :  { %207 = vst [vmem:[#allocation3 + $0x38] sm:$0xf] %v203_v32  ;;  %v279_v36 = vsel %vm276_vm4, %v269_v35, %v271_v34 }
  0xbb   :  { %v304_v37 = vmul.f32 %v287_v33, %v279_v36  ;;  %v351_v36 = vrot.slane %v338_v14, %v1500_v16 }
  0xbc   :  { %v474_v42 = vld [vmem:[#allocation3 + $0x28] sm:$0xff] }
  0xbd   :  { %v312_v44 = vrot.slane %v304_v37, 4  ;;  %v275_v45 = vpop.permute.xlu1 %274  ;;  %v273_v46 = vpop.permute.xlu0 %272  ;;  %v1225_v47 = vpack.c.bf16 %v474_v42, %v470_v41  ;;  %v438_v37 = vld [vmem:[#allocation5 + $0x20] ss:$8 sm:$0xf] }
  0xbe   :  { %v280_v48 = vsel %vm276_vm4, %v275_v45, %v269_v35  ;;  %v277_v49 = vsel %vm276_vm4, %v273_v46, %v275_v45  ;;  %v278_v50 = vsel %vm276_vm4, %v271_v34, %v273_v46  ;;  %v355_v34 = vrot.slane %v338_v14, %v1496_v11 }
  0xbf   :  { %320 = vst [vmem:[#allocation3 + $0x40] sm:$0xf0] %v312_v44  ;;  %v307_v51 = vmul.f32 %v299_v38, %v280_v48  ;;  %v305_v52 = vmul.f32 %v291_v39, %v278_v50  ;;  %v306_v53 = vmul.f32 %v295_v40, %v277_v49  ;;  %1226 = vmatprep.subr.bf16.mxu0 %v1225_v47 }
  0xc0   :  { %v473_v56 = vld [vmem:[#allocation3 + $0x20] sm:$0xff]  ;;  %v475_v58 = vld [vmem:[#allocation3 + $0x30] sm:$0xff]  ;;  %v347_v35 = vrot.slane %v338_v14, %v1498_v15  ;;  %v443_v46 = vrot.slane %v438_v37, %v1494_v10 }
  0xc1   :  { %v476_v57 = vld [vmem:[#allocation3 + $0x38] sm:$0xff]  ;;  %v315_v59 = vrot.slane %v307_v51, 4  ;;  %v313_v60 = vrot.slane %v305_v52, 4  ;;  %v314_v61 = vrot.slane %v306_v53, 4  ;;  %v371_v62 = vpop.permute.xlu1 %370  ;;  %v369_v63 = vpop.permute.xlu0 %368  ;;  %v1227_v0 = vpack.c.bf16 %v473_v56, %v469_v55  ;;  %v468_v14 = vld [vmem:[#allocation8] sm:$0xff] }
  0xc2   :  { %v379_v3 = vsel %vm376_vm5, %v369_v63, %v371_v62  ;;  %v1233_v5 = vpack.c.bf16 %v476_v57, %v472_v1  ;;  %v1235_v6 = vpack.c.bf16 %v475_v58, %v471_v2  ;;  %v455_v51 = vrot.slane %v438_v37, %v1496_v11 }
  0xc3   :  { %323 = vst [vmem:[#allocation3 + $0x58] sm:$0xf0] %v315_v59  ;;  %321 = vst [vmem:[#allocation3 + $0x48] sm:$0xf0] %v313_v60  ;;  %v404_v7 = vmul.f32 %v387_v54, %v379_v3  ;;  %1228 = vmatpush1.bf16.msra.mxu0 %v1227_v0  ;;  %v447_v52 = vrot.slane %v438_v37, %v1498_v15  ;;  %v451_v53 = vrot.slane %v438_v37, %v1500_v16 }
  0xc4   :  { %322 = vst [vmem:[#allocation3 + $0x50] sm:$0xf0] %v314_v61  ;;  %1234 = vmatprep.subr.bf16.mxu1 %v1233_v5 }
  0xc5   :  { %v412_v17 = vrot.slane %v404_v7, 4  ;;  %1236 = vmatpush1.bf16.msra.mxu1 %v1235_v6  ;;  %v375_v18 = vpop.permute.xlu1 %374  ;;  %v373_v19 = vpop.permute.xlu0 %372 }
  0xc6   :  { %v380_v20 = vsel %vm376_vm5, %v375_v18, %v369_v63  ;;  %v377_v21 = vsel %vm376_vm5, %v373_v19, %v375_v18  ;;  %v378_v22 = vsel %vm376_vm5, %v371_v62, %v373_v19 }
  0xc7   :  { %420 = vst [vmem:[#allocation3 + $0x60] sm:$0xf0] %v412_v17  ;;  %v407_v23 = vmul.f32 %v399_v8, %v380_v20  ;;  %v405_v24 = vmul.f32 %v391_v12, %v378_v22  ;;  %v406_v25 = vmul.f32 %v395_v13, %v377_v21  ;;  %v477_v8 = vld [vmem:[#allocation3 + $0x40] sm:$0xff] }
  0xc9   :  { %v415_v27 = vrot.slane %v407_v23, 4  ;;  %v413_v28 = vrot.slane %v405_v24, 4  ;;  %v414_v29 = vrot.slane %v406_v25, 4  ;;  %v327_v30 = vpop.permute.xlu1 %326  ;;  %v325_v31 = vpop.permute.xlu0 %324 }
  0xca   :  { %v335_v32 = vsel %vm332_vm6, %v325_v31, %v327_v30  ;;  %v478_v59 = vld [vmem:[#allocation3 + $0x48] sm:$0xff]  ;;  %v480_v63 = vld [vmem:[#allocation3 + $0x58] sm:$0xff] }
  0xcb   :  { %423 = vst [vmem:[#allocation3 + $0x78] sm:$0xf0] %v415_v27  ;;  %421 = vst [vmem:[#allocation3 + $0x68] sm:$0xf0] %v413_v28  ;;  %v360_v33 = vmul.f32 %v343_v26, %v335_v32  ;;  %v479_v1 = vld [vmem:[#allocation3 + $0x50] sm:$0xff] }
  0xcc   :  { %422 = vst [vmem:[#allocation3 + $0x70] sm:$0xf0] %v414_v29 }
  0xcd   :  { %364 = vst [vmem:[#allocation3 + $0x60] sm:$0xf] %v360_v33  ;;  %v331_v38 = vpop.permute.xlu1 %330  ;;  %v329_v39 = vpop.permute.xlu0 %328  ;;  %v1035_v33 = vld [vmem:[%s1803_s5] sm:$0xf] }
  0xce   :  { %v336_v40 = vsel %vm332_vm6, %v331_v38, %v325_v31  ;;  %v333_v41 = vsel %vm332_vm6, %v329_v39, %v331_v38  ;;  %v334_v42 = vsel %vm332_vm6, %v327_v30, %v329_v39  ;;  %v670_v38 = vld [vmem:[#allocation5] ss:$8 sm:$0xf] }
  0xcf   :  { %v363_v43 = vmul.f32 %v355_v34, %v336_v40  ;;  %v361_v44 = vmul.f32 %v347_v35, %v334_v42  ;;  %v362_v45 = vmul.f32 %v351_v36, %v333_v41  ;;  %v712_v40 = vld [vmem:[#allocation5 + $0x1] ss:$8 sm:$0xf]  ;;  %v679_v42 = vrot.slane %v670_v38, %v1498_v15 }
  0xd1   :  { %367 = vst [vmem:[#allocation3 + $0x78] sm:$0xf] %v363_v43  ;;  %365 = vst [vmem:[#allocation3 + $0x68] sm:$0xf] %v361_v44  ;;  %v427_v47 = vpop.permute.xlu1 %426  ;;  %v425_v48 = vpop.permute.xlu0 %424  ;;  %v721_v43 = vrot.slane %v712_v40, %v1498_v15 }
  0xd2   :  { %366 = vst [vmem:[#allocation3 + $0x70] sm:$0xf] %v362_v45  ;;  %v435_v49 = vsel %vm432_vm7, %v425_v48, %v427_v47 }
  0xd3   :  { %v460_v50 = vmul.f32 %v443_v46, %v435_v49  ;;  %v675_v46 = vrot.slane %v670_v38, %v1494_v10  ;;  %v725_v49 = vrot.slane %v712_v40, %v1500_v16 }
  0xd4   :  { %v481_v0 = vld [vmem:[#allocation3 + $0x60] sm:$0xff] }
  0xd5   :  { %464 = vst [vmem:[#allocation3 + $0x80] sm:$0xf] %v460_v50  ;;  %v431_v54 = vpop.permute.xlu1 %430  ;;  %v429_v55 = vpop.permute.xlu0 %428  ;;  %v1231_v13 = vpack.c.bf16 %v481_v0, %v477_v8 }
  0xd6   :  { %v436_v56 = vsel %vm432_vm7, %v431_v54, %v425_v48  ;;  %v433_v57 = vsel %vm432_vm7, %v429_v55, %v431_v54  ;;  %v434_v58 = vsel %vm432_vm7, %v427_v47, %v429_v55  ;;  %v687_v48 = vrot.slane %v670_v38, %v1496_v11 }
  0xd7   :  { %v463_v60 = vmul.f32 %v455_v51, %v436_v56  ;;  %v461_v61 = vmul.f32 %v447_v52, %v434_v58  ;;  %v462_v62 = vmul.f32 %v451_v53, %v433_v57  ;;  %v717_v51 = vrot.slane %v712_v40, %v1494_v10 }
  0xd8   :  { %v482_v2 = vld [vmem:[#allocation3 + $0x68] sm:$0xff]  ;;  %v484_v3 = vld [vmem:[#allocation3 + $0x78] sm:$0xff]  ;;  %v729_v55 = vrot.slane %v712_v40, %v1496_v11  ;;  %v683_v56 = vrot.slane %v670_v38, %v1500_v16 }
  0xd9   :  { %v483_v5 = vld [vmem:[#allocation3 + $0x70] sm:$0xff]  ;;  %467 = vst [vmem:[#allocation3 + $0x98] sm:$0xf] %v463_v60  ;;  %465 = vst [vmem:[#allocation3 + $0x88] sm:$0xf] %v461_v61  ;;  %v1229_v6 = vpack.c.bf16 %v482_v2, %v478_v59  ;;  %v1237_v7 = vpack.c.bf16 %v484_v3, %v480_v63 }
  0xda   :  { %466 = vst [vmem:[#allocation3 + $0x90] sm:$0xf] %v462_v62  ;;  %v1239_v12 = vpack.c.bf16 %v483_v5, %v479_v1 }
  0xdb   :  { %1230 = vmatprep.subr.bf16.mxu0 %v1229_v6  ;;  %1238 = vmatprep.subr.bf16.mxu1 %v1237_v7 }
  0xdc   :  { %1232 = vmatpush1.bf16.msra.mxu0 %v1231_v13  ;;  %1240 = vmatpush1.bf16.msra.mxu1 %v1239_v12  ;;  %v485_v20 = vld [vmem:[#allocation3 + $0x80] sm:$0xf] }
  0xe0   :  { %v486_v17 = vld [vmem:[#allocation3 + $0x88] sm:$0xf]  ;;  %v488_v18 = vld [vmem:[#allocation3 + $0x98] sm:$0xf] }
  0xe1   :  { %v487_v19 = vld [vmem:[#allocation3 + $0x90] sm:$0xf]  ;;  %1217 = vmatprep.subr.msk.mxu0 %vm499_vm8, %v486_v17  ;;  %1220 = vmatprep.subr.msk.mxu1 %vm499_vm8, %v488_v18 }
  0xe2   :  { %1218 = vmatpush1.msk.msra.mxu0 %vm499_vm8, %v485_v20  ;;  %1221 = vmatpush1.msk.msra.mxu1 %vm499_vm8, %v487_v19  ;;  %v754_v18 = vld [vmem:[#allocation5 + $0x2] ss:$8 sm:$0xf]  ;;  %v796_v20 = vld [vmem:[#allocation5 + $0x3] ss:$8 sm:$0xf] }
  0xe3   :  { %1219 = vmatmul.mubr.msk.f32.vlgmr.msra.gmra.mrb[0].mxu0 %vm495_vm9, %v468_v14  ;;  %1222 = vmatmul.mubr.msk.f32.vlgmr.msra.gmra.mrb[0].mxu1 %vm495_vm9, %v468_v14  ;;  %v767_v40 = vrot.slane %v754_v18, %v1500_v16 }
  0xe4   :  { %1109 = vmatprep.mubr.f32.mxu0 %v1385_v4  ;;  %1180 = vmatprep.mubr.f32.mxu1 %v1385_v4 }
  0xe6   :  { %v493_v21 = vpop.permute.xlu0 %492 }
 0x1b6   :  { %v649_v22 = vpop.f32.mrb[0].mxu1  ;;  %v578_v23 = vpop.f32.mrb[0].mxu0 }
 0x1b7   :  { %v650_v24 = vadd.f32 %v649_v22, %v493_v21  ;;  %v579_v25 = vadd.f32 %v578_v23, %v493_v21  ;;  %v580_v26 = vpop.f32.mrb[1].mxu0  ;;  %v651_v27 = vpop.f32.mrb[1].mxu1  ;;  %v763_v22 = vrot.slane %v754_v18, %v1498_v15  ;;  %v805_v23 = vrot.slane %v796_v20, %v1498_v15 }
 0x1b8   :  { %v581_v28 = vadd.f32 %v580_v26, %v493_v21  ;;  %v652_v29 = vadd.f32 %v651_v27, %v493_v21  ;;  %v759_v26 = vrot.slane %v754_v18, %v1494_v10 }
 0x1b9   :  { %1293 = vtanh.f32 %v650_v24 }
 0x1ba   :  { %1295 = vtanh.f32 %v579_v25 }
 0x1bb   :  { %1297 = vtanh.f32 %v581_v28  ;;  %v771_v28 = vrot.slane %v754_v18, %v1496_v11 }
 0x1bc   :  { %1299 = vtanh.f32 %v652_v29  ;;  %v809_v29 = vrot.slane %v796_v20, %v1500_v16 }
 0x1c3   :  { %v1608_v30 = vpop.eup %1293 }
 0x1c4   :  { %v1610_v31 = vpop.eup %1295  ;;  %662 = vrot.lane.b32.xlu0 %v1608_v30, %s1379_s1 }
 0x1c5   :  { %658 = vrot.lane.b32.xlu1 %v1610_v31, %s1379_s1  ;;  %v1616_v4 = vpop.eup %1297 }
 0x1c6   :  { %v1622_v32 = vpop.eup %1299 }
 0x1c8   :  { %700 = vrot.lane.b32.xlu0 %v1610_v31, %s1377_s26 }
 0x1c9   :  { %660 = vrot.lane.b32.xlu1 %v1616_v4, %s1379_s1 }
 0x1cc   :  { %704 = vrot.lane.b32.xlu0 %v1608_v30, %s1377_s26 }
 0x1cd   :  { %664 = vrot.lane.b32.xlu1 %v1622_v32, %s1379_s1 }
 0x1d0   :  { %742 = vrot.lane.b32.xlu0 %v1610_v31, %s1380_s27 }
 0x1d1   :  { %702 = vrot.lane.b32.xlu1 %v1616_v4, %s1377_s26 }
 0x1d4   :  { %746 = vrot.lane.b32.xlu0 %v1608_v30, %s1380_s27 }
 0x1d5   :  { %706 = vrot.lane.b32.xlu1 %v1622_v32, %s1377_s26 }
 0x1d8   :  { %784 = vrot.lane.b32.xlu0 %v1610_v31, %s1378_s2 }
 0x1d9   :  { %744 = vrot.lane.b32.xlu1 %v1616_v4, %s1380_s27 }
 0x1dc   :  { %788 = vrot.lane.b32.xlu0 %v1608_v30, %s1378_s2 }
 0x1dd   :  { %748 = vrot.lane.b32.xlu1 %v1622_v32, %s1380_s27 }
 0x1e0   :  { %830 = vrot.lane.b32.xlu0 %v1610_v31, %s1381_s28 }
 0x1e1   :  { %786 = vrot.lane.b32.xlu1 %v1616_v4, %s1378_s2 }
 0x1e4   :  { %834 = vrot.lane.b32.xlu0 %v1608_v30, %s1381_s28 }
 0x1e5   :  { %790 = vrot.lane.b32.xlu1 %v1622_v32, %s1378_s2 }
 0x1e8   :  { %872 = vrot.lane.b32.xlu0 %v1610_v31, %s1383_s30 }
 0x1e9   :  { %832 = vrot.lane.b32.xlu1 %v1616_v4, %s1381_s28 }
 0x1ec   :  { %876 = vrot.lane.b32.xlu0 %v1608_v30, %s1383_s30 }
 0x1ed   :  { %836 = vrot.lane.b32.xlu1 %v1622_v32, %s1381_s28 }
 0x1f0   :  { %914 = vrot.lane.b32.xlu0 %v1610_v31, %s1382_s29 }
 0x1f1   :  { %874 = vrot.lane.b32.xlu1 %v1616_v4, %s1383_s30 }
 0x1f4   :  { %918 = vrot.lane.b32.xlu0 %v1608_v30, %s1382_s29 }
 0x1f5   :  { %878 = vrot.lane.b32.xlu1 %v1622_v32, %s1383_s30 }
 0x1f8   :  { %956 = vrot.lane.b32.xlu0 %v1610_v31, %s1384_s7 }
 0x1f9   :  { %916 = vrot.lane.b32.xlu1 %v1616_v4, %s1382_s29 }
 0x1fc   :  { %960 = vrot.lane.b32.xlu0 %v1608_v30, %s1384_s7 }
 0x1fd   :  { %920 = vrot.lane.b32.xlu1 %v1622_v32, %s1382_s29 }
 0x200   :  { %1038 = vperm.xlu0 %1290, %v1035_v33  }
 0x201   :  { %958 = vrot.lane.b32.xlu1 %v1616_v4, %s1384_s7 }
 0x205   :  { %962 = vrot.lane.b32.xlu1 %v1622_v32, %s1384_s7 }
 0x236   :  { %v663_v34 = vpop.permute.xlu0 %662 }
 0x237   :  { %v659_v35 = vpop.permute.xlu1 %658 }
 0x23a   :  { %v701_v36 = vpop.permute.xlu0 %700 }
 0x23b   :  { %v661_v37 = vpop.permute.xlu1 %660 }
 0x23c   :  { %v668_v44 = vsel %vm73_vm2, %v659_v35, %v661_v37  ;;  %v667_v60 = vsel %vm73_vm2, %v661_v37, %v663_v34 }
 0x23d   :  { %v693_v52 = vmul.f32 %v679_v42, %v668_v44  ;;  %v694_v7 = vmul.f32 %v683_v56, %v667_v60 }
 0x23e   :  { %v705_v39 = vpop.permute.xlu0 %704 }
 0x23f   :  { %v665_v41 = vpop.permute.xlu1 %664 }
 0x240   :  { %v666_v57 = vsel %vm73_vm2, %v663_v34, %v665_v41  ;;  %v669_v58 = vsel %vm73_vm2, %v665_v41, %v659_v35  ;;  %v801_v34 = vrot.slane %v796_v20, %v1494_v10  ;;  %v842_v35 = vld [vmem:[#allocation5 + $0x5] ss:$8 sm:$0xf] }
 0x241   :  { %v692_v2 = vmul.f32 %v675_v46, %v669_v58  ;;  %v695_v3 = vmul.f32 %v687_v48, %v666_v57  ;;  %v847_v48 = vrot.slane %v842_v35, %v1494_v10 }
 0x242   :  { %v743_v45 = vpop.permute.xlu0 %742 }
 0x243   :  { %v703_v47 = vpop.permute.xlu1 %702 }
 0x244   :  { %v710_v50 = vsel %vm116_vm0, %v701_v36, %v703_v47  ;;  %v709_v53 = vsel %vm116_vm0, %v703_v47, %v705_v39 }
 0x245   :  { %v735_v54 = vmul.f32 %v721_v43, %v710_v50  ;;  %v736_v63 = vmul.f32 %v725_v49, %v709_v53 }
 0x246   :  { %v747_v59 = vpop.permute.xlu0 %746 }
 0x247   :  { %v707_v61 = vpop.permute.xlu1 %706  ;;  %v1241_v62 = vpack.c.bf16 %v735_v54, %v693_v52  ;;  %v1259_v17 = vpack.c.bf16 %v736_v63, %v694_v7  ;;  %v851_v52 = vrot.slane %v842_v35, %v1498_v15 }
 0x248   :  { %v708_v0 = vsel %vm116_vm0, %v705_v39, %v707_v61  ;;  %v711_v1 = vsel %vm116_vm0, %v707_v61, %v701_v36  ;;  %v813_v39 = vrot.slane %v796_v20, %v1496_v11 }
 0x249   :  { %v734_v5 = vmul.f32 %v717_v51, %v711_v1  ;;  %v737_v6 = vmul.f32 %v729_v55, %v708_v0  ;;  %1242 = vmatprep.subr.bf16.mxu0 %v1241_v62  ;;  %v855_v0 = vrot.slane %v842_v35, %v1500_v16 }
 0x24a   :  { %v785_v8 = vpop.permute.xlu0 %784 }
 0x24b   :  { %v1243_v12 = vpack.c.bf16 %v734_v5, %v692_v2  ;;  %v745_v13 = vpop.permute.xlu1 %744  ;;  %v1257_v14 = vpack.c.bf16 %v737_v6, %v695_v3  ;;  %v859_v3 = vrot.slane %v842_v35, %v1496_v11 }
 0x24c   :  { %v752_v24 = vsel %vm172_vm3, %v743_v45, %v745_v13  ;;  %v751_v44 = vsel %vm172_vm3, %v745_v13, %v747_v59 }
 0x24d   :  { %1244 = vmatpush1.bf16.msra.mxu0 %v1243_v12  ;;  %1258 = vmatprep.subr.bf16.mxu1 %v1257_v14  ;;  %v777_v36 = vmul.f32 %v763_v22, %v752_v24  ;;  %v778_v56 = vmul.f32 %v767_v40, %v751_v44 }
 0x24e   :  { %1260 = vmatpush1.bf16.msra.mxu1 %v1259_v17  ;;  %v789_v19 = vpop.permute.xlu0 %788 }
 0x24f   :  { %v749_v21 = vpop.permute.xlu1 %748 }
 0x250   :  { %v750_v41 = vsel %vm172_vm3, %v747_v59, %v749_v21  ;;  %v753_v42 = vsel %vm172_vm3, %v749_v21, %v743_v45 }
 0x251   :  { %v776_v53 = vmul.f32 %v759_v26, %v753_v42  ;;  %v779_v54 = vmul.f32 %v771_v28, %v750_v41 }
 0x252   :  { %v831_v25 = vpop.permute.xlu0 %830 }
 0x253   :  { %v787_v27 = vpop.permute.xlu1 %786 }
 0x254   :  { %v794_v33 = vsel %vm216_vm1, %v785_v8, %v787_v27  ;;  %v793_v37 = vsel %vm216_vm1, %v787_v27, %v789_v19 }
 0x255   :  { %v819_v38 = vmul.f32 %v805_v23, %v794_v33  ;;  %v820_v49 = vmul.f32 %v809_v29, %v793_v37 }
 0x256   :  { %v835_v43 = vpop.permute.xlu0 %834 }
 0x257   :  { %v791_v46 = vpop.permute.xlu1 %790  ;;  %v1245_v47 = vpack.c.bf16 %v819_v38, %v777_v36  ;;  %v1263_v61 = vpack.c.bf16 %v820_v49, %v778_v56 }
 0x258   :  { %v792_v50 = vsel %vm216_vm1, %v789_v19, %v791_v46  ;;  %v795_v51 = vsel %vm216_vm1, %v791_v46, %v785_v8 }
 0x259   :  { %v818_v45 = vmul.f32 %v801_v34, %v795_v51  ;;  %v821_v55 = vmul.f32 %v813_v39, %v792_v50  ;;  %1246 = vmatprep.subr.bf16.mxu0 %v1245_v47 }
 0x25a   :  { %v873_v57 = vpop.permute.xlu0 %872 }
 0x25b   :  { %v1247_v58 = vpack.c.bf16 %v818_v45, %v776_v53  ;;  %v833_v59 = vpop.permute.xlu1 %832  ;;  %v1261_v60 = vpack.c.bf16 %v821_v55, %v779_v54 }
 0x25c   :  { %v839_v62 = vsel %vm276_vm4, %v833_v59, %v835_v43  ;;  %v840_v63 = vsel %vm276_vm4, %v831_v25, %v833_v59 }
 0x25d   :  { %v864_v1 = vmul.f32 %v847_v48, %v840_v63  ;;  %v865_v2 = vmul.f32 %v851_v52, %v839_v62  ;;  %1248 = vmatpush1.bf16.msra.mxu0 %v1247_v58  ;;  %1262 = vmatprep.subr.bf16.mxu1 %v1261_v60 }
 0x25e   :  { %1264 = vmatpush1.bf16.msra.mxu1 %v1263_v61  ;;  %v877_v5 = vpop.permute.xlu0 %876 }
 0x25f   :  { %v1251_v6 = vpack.c.bf16 %v864_v1, %v1610_v31  ;;  %v837_v7 = vpop.permute.xlu1 %836  ;;  %v1249_v8 = vpack.c.bf16 %v865_v2, %v1616_v4  ;;  %v884_v31 = vld [vmem:[#allocation5 + $0x6] ss:$8 sm:$0xf]  ;;  %v926_v4 = vld [vmem:[#allocation5 + $0x7] ss:$8 sm:$0xf] }
 0x260   :  { %v838_v12 = vsel %vm276_vm4, %v835_v43, %v837_v7  ;;  %v841_v13 = vsel %vm276_vm4, %v837_v7, %v831_v25  ;;  %v889_v24 = vrot.slane %v884_v31, %v1494_v10  ;;  %v893_v25 = vrot.slane %v884_v31, %v1498_v15  ;;  %v968_v43 = vld [vmem:[#allocation5 + $0x20] ss:$8 sm:$0xf] }
 0x261   :  { %v866_v14 = vmul.f32 %v855_v0, %v838_v12  ;;  %v867_v17 = vmul.f32 %v859_v3, %v841_v13  ;;  %1250 = vmatprep.subr.bf16.mxu0 %v1249_v8  ;;  %v931_v26 = vrot.slane %v926_v4, %v1494_v10  ;;  %v935_v27 = vrot.slane %v926_v4, %v1498_v15  ;;  %v998_v1 = vld [vmem:[%s1802_s4] sm:$0xf]  ;;  %s1387_s4 = smov [#allocation10]  }
 0x262   :  { %1252 = vmatpush1.bf16.msra.mxu0 %v1251_v6  ;;  %v915_v18 = vpop.permute.xlu0 %914  ;;  %v897_v28 = vrot.slane %v884_v31, %v1500_v16  ;;  %v901_v29 = vrot.slane %v884_v31, %v1496_v11  ;;  %v939_v36 = vrot.slane %v926_v4, %v1500_v16  ;;  %v943_v37 = vrot.slane %v926_v4, %v1496_v11  ;;  %s1203_s12 = sshll.u32 %s1387_s4, 4  ;;  %s1204_s12 = int_to_ptr.vmem [resolvable:$true] %s1203_s12 }
 0x263   :  { %v1267_v19 = vpack.c.bf16 %v866_v14, %v1608_v30  ;;  %v875_v20 = vpop.permute.xlu1 %874  ;;  %v1265_v21 = vpack.c.bf16 %v867_v17, %v1622_v32  ;;  %v973_v52 = vrot.slane %v968_v43, %v1494_v10  ;;  %v977_v53 = vrot.slane %v968_v43, %v1498_v15  ;;  %s1345_s13 = scalar_lea.vmem %s1204_s12, 256  ;;  %p1350_p3 = scmp.lt.s32.totalorder %s1204_s12, %s1204_s12 }
 0x264   :  { %v881_v30 = vsel %vm332_vm6, %v875_v20, %v877_v5  ;;  %v882_v32 = vsel %vm332_vm6, %v873_v57, %v875_v20  ;;  %v981_v15 = vrot.slane %v968_v43, %v1500_v16  ;;  %v985_v0 = vrot.slane %v968_v43, %v1496_v11  ;;  %p1346_p2 = scmp.ne.s32.totalorder %s1204_s12, %s1345_s13  ;;  %p1351_p4 = scmp.lt.s32.totalorder %s1345_s13, %s1345_s13 }
 0x265   :  { %1266 = vmatprep.subr.bf16.mxu1 %v1265_v21  ;;  %v906_v38 = vmul.f32 %v889_v24, %v882_v32  ;;  %v907_v39 = vmul.f32 %v893_v25, %v881_v30 }
 0x266   :  { %1268 = vmatpush1.bf16.msra.mxu1 %v1267_v19  ;;  %v919_v22 = vpop.permute.xlu0 %918  ;;  %p1352_p5 = por %p1351_p4, %p1350_p3 }
 0x267   :  { %v879_v23 = vpop.permute.xlu1 %878 }
 0x268   :  { %v880_v44 = vsel %vm332_vm6, %v877_v5, %v879_v23  ;;  %v883_v46 = vsel %vm332_vm6, %v879_v23, %v873_v57  ;;  %p1353_p6 = pnand %p1352_p5, %p1346_p2 }
 0x269   :  { %v908_v54 = vmul.f32 %v897_v28, %v880_v44  ;;  %v909_v45 = vmul.f32 %v901_v29, %v883_v46 }
 0x26a   :  { %v957_v40 = vpop.permute.xlu0 %956 }
 0x26b   :  { %v917_v33 = vpop.permute.xlu1 %916 }
 0x26c   :  { %v923_v34 = vsel %vm376_vm5, %v917_v33, %v919_v22  ;;  %v924_v35 = vsel %vm376_vm5, %v915_v18, %v917_v33 }
 0x26d   :  { %v948_v41 = vmul.f32 %v931_v26, %v924_v35  ;;  %v949_v42 = vmul.f32 %v935_v27, %v923_v34 }
 0x26e   :  { %v961_v57 = vpop.permute.xlu0 %960 }
 0x26f   :  { %v1255_v47 = vpack.c.bf16 %v948_v41, %v906_v38  ;;  %v921_v48 = vpop.permute.xlu1 %920  ;;  %v1253_v49 = vpack.c.bf16 %v949_v42, %v907_v39 }
 0x270   :  { %v922_v50 = vsel %vm376_vm5, %v919_v22, %v921_v48  ;;  %v925_v51 = vsel %vm376_vm5, %v921_v48, %v915_v18 }
 0x271   :  { %v950_v55 = vmul.f32 %v939_v36, %v922_v50  ;;  %v951_v56 = vmul.f32 %v943_v37, %v925_v51  ;;  %1254 = vmatprep.subr.bf16.mxu0 %v1253_v49 }
 0x272   :  { %1256 = vmatpush1.bf16.msra.mxu0 %v1255_v47 }
 0x273   :  { %v1271_v58 = vpack.c.bf16 %v950_v55, %v908_v54  ;;  %v959_v59 = vpop.permute.xlu1 %958  ;;  %v1269_v60 = vpack.c.bf16 %v951_v56, %v909_v45 }
 0x274   :  { %v965_v61 = vsel %vm432_vm7, %v959_v59, %v961_v57  ;;  %v966_v62 = vsel %vm432_vm7, %v957_v40, %v959_v59 }
 0x275   :  { %v990_v63 = vmul.f32 %v973_v52, %v966_v62  ;;  %v991_v10 = vmul.f32 %v977_v53, %v965_v61  ;;  %1270 = vmatprep.subr.bf16.mxu1 %v1269_v60 }
 0x276   :  { %1272 = vmatpush1.bf16.msra.mxu1 %v1271_v58 }
 0x277   :  { %1061 = vmatprep.subr.mxu0 %v991_v10  ;;  %v963_v2 = vpop.permute.xlu1 %962 }
 0x278   :  { %v964_v3 = vsel %vm432_vm7, %v961_v57, %v963_v2  ;;  %v967_v5 = vsel %vm432_vm7, %v963_v2, %v957_v40  ;;  %1062 = vmatpush1.msra.mxu0 %v990_v63 }
 0x279   :  { %v992_v6 = vmul.f32 %v981_v15, %v964_v3  ;;  %v993_v7 = vmul.f32 %v985_v0, %v967_v5  ;;  %1223 = vmatmul.mubr.msk.f32.vlgmr.msra.gmra.mrb[2].mxu0 %vm1041_vm10, %v998_v1 }
 0x27b   :  { %1132 = vmatprep.subr.mxu1 %v993_v7 }
 0x27c   :  { %1133 = vmatpush1.msra.mxu1 %v992_v6 }
 0x27d   :  { %1224 = vmatmul.mubr.msk.f32.vlgmr.msra.gmra.mrb[2].mxu1 %vm1041_vm10, %v998_v1 }
 0x27f   :  { %v1039_v11 = vpop.permute.xlu0 %1038 }
 0x34c   :  { %v1111_v16 = vpop.f32.mrb[2].mxu0 }
 0x34d   :  { %v1112_v8 = vadd.f32 %v1111_v16, %v1039_v11  ;;  %v1113_v12 = vpop.f32.mrb[3].mxu0 }
 0x34e   :  { %v1114_v13 = vadd.f32 %v1113_v12, %v1039_v11 }
 0x350   :  { %v1189_v14 = vcombine.low %v1112_v8, %v1114_v13  ;;  %v1182_v17 = vpop.f32.mrb[2].mxu1 }
 0x351   :  { %v1183_v18 = vadd.f32 %v1182_v17, %v1039_v11  ;;  %v1184_v19 = vpop.f32.mrb[3].mxu1 }
 0x352   :  { %1191 = vst [vmem:[#allocation10] sm:$0xff] %v1189_v14  ;;  %v1185_v9 = vadd.f32 %v1184_v19, %v1039_v11 }
 0x354   :  { %v1194_v20 = vcombine.low %v1183_v18, %v1185_v9 }
 0x356   :  { %1197 = vst [vmem:[#allocation10 + $0x8] sm:$0xff] %v1194_v20 }
 0x357   :  { %1356 = shalt.err (!%p1353_p6)
}
 0x358   :  { %s1357_s16 = scalar_lea.hbm %s1804_s6, 256 }
 0x359   :  { %p1358_p7 = scmp.ne.s32.totalorder %s1804_s6, %s1357_s16  ;;  %p1361_p8 = scmp.lt.u32.totalorder %s1357_s16, %s1804_s6 }
 0x35b   :  { %p1363_p9 = pnand %p1361_p8, %p1358_p7 }
 0x35d   :  { %1366 = shalt.err (!%p1363_p9)
}
 0x35e   :  { %s1388_s0 = smov 128   ;;  %s1389_s21 = smov 8  }
 0x35f   :  { %1209 = dma.vmem_to_hbm [thread:$0]  %s1204_s12, 256, %s1804_s6, [#allocation7], %s1388_s0, %s1388_s0, %s1389_s21  }
 0x360   :  { %1371 = dma.done.wait [#allocation7], 256  }
 0x361   :  { %1372 = vsyncadd [#allocation7], 4294967040 }
 0x362   :  { %1213 = vsyncpa [#allocation6], 1 }
 0x363   :  { %1214 = vsyncpa [#allocation9], 1 }
 0x364   :  { %1215 = vsyncpa [#allocation7], 1 }

</bundles_post_ra>
